<compile_context>
chip_gen: v7x
topology: tpu7x:2x2x1
jax: 0.10.0
libtpu: 0.0.40
codegen_flags: <defaults>
</compile_context>

<pallas_src>
import functools

import jax
import jax.numpy as jnp
from jax.experimental import pallas as pl
from jax.experimental.pallas import tpu as pltpu


def _round_up(v, m):
    return ((v + m - 1) // m) * m


def _pick_row_tile(total_rows, row_bytes, budget_bytes=4 * 1024 * 1024):
    """Largest row tile that (a) divides total_rows exactly (no ragged edge) and
    (b) keeps the per-grid-step in+out VMEM blocks under `budget_bytes`
    (double buffering roughly doubles the resident footprint)."""
    cap = max(1, min(total_rows, budget_bytes // max(row_bytes, 1), 2048))
    for r in range(int(cap), 0, -1):
        if total_rows % r == 0:
            return r
    return 1


def _space_to_depth_kernel(x_ref, o_ref, *, block_size, bc):
    # x_ref: (ROWS, b, Wb, b*C)      o_ref: (ROWS, Wb, b*b*C)
    # For each intra-block row h_in, move the whole (ROWS, Wb, b*C) slab with a
    # single lane-dense copy:  out[:, j, h_in*bc + wc] = in[:, h_in, j, wc].
    for h_in in range(block_size):
        o_ref[:, :, h_in * bc:(h_in + 1) * bc] = x_ref[:, h_in, :, :]


def space_to_depth(x, block_size):
    """Pallas implementation of SpaceToDepth.forward for NCHW input."""
    B, C, H, W = x.shape
    b = block_size
    assert H % b == 0 and W % b == 0, "spatial dims must be divisible by block_size"
    Hb, Wb = H // b, W // b
    bc = b * C
    rows = B * Hb

    itemsize = jnp.dtype(x.dtype).itemsize
    sub = max(1, 32 // max(itemsize, 1))  # sublane packing: 8 f32 / 16 bf16 / 32 i8

    # Conservative per-row VMEM footprint (lane dim padded to 128, sublanes to `sub`).
    in_row_bytes = b * _round_up(Wb, sub) * _round_up(bc, 128) * itemsize
    out_row_bytes = _round_up(Wb, sub) * _round_up(b * bc, 128) * itemsize
    rows_per_step = _pick_row_tile(rows, in_row_bytes + out_row_bytes)

    # Glue: NCHW -> channels-last flattened 4-D view (layout plumbing; header note).
    x_nhwc = jnp.transpose(x, (0, 2, 3, 1))          # (B, H, W, C)
    x4 = x_nhwc.reshape(rows, b, Wb, bc)             # free row-major reshape

    kernel = functools.partial(_space_to_depth_kernel, block_size=b, bc=bc)
    out3 = pl.pallas_call(
        kernel,
        out_shape=jax.ShapeDtypeStruct((rows, Wb, b * bc), x.dtype),
        grid=(rows // rows_per_step,),
        in_specs=[pl.BlockSpec((rows_per_step, b, Wb, bc),
                               lambda r: (r, 0, 0, 0))],
        out_specs=pl.BlockSpec((rows_per_step, Wb, b * bc),
                               lambda r: (r, 0, 0)),
        compiler_params=pltpu.CompilerParams(
            dimension_semantics=("parallel",)),
    )(x4)

    # Glue: back to the PyTorch output layout (B, C*b*b, H//b, W//b).
    out_nhwc = out3.reshape(B, Hb, Wb, b * b * C)
    return jnp.transpose(out_nhwc, (0, 3, 1, 2))


def space_to_depth_reference(x, block_size):
    """Pure-JAX reference with identical semantics (for verification)."""
    B, C, H, W = x.shape
    b = block_size
    Hb, Wb = H // b, W // b
    y = x.reshape(B, C, Hb, b, Wb, b)
    y = jnp.transpose(y, (0, 3, 5, 1, 2, 4))         # (B, h_in, w_in, C, Hb, Wb)
    return y.reshape(B, b * b * C, Hb, Wb)


if __name__ == "__main__":
    block_size = 2

    # Small shape matching the module's expected use (NCHW).
    x_small = jax.random.normal(jax.random.PRNGKey(0), (2, 4, 16, 16), dtype=jnp.float32)
    fn = jax.jit(functools.partial(space_to_depth, block_size=block_size))
    out_small = jax.block_until_ready(fn(x_small))
    ref_small = space_to_depth_reference(x_small, block_size)
    assert out_small.shape == (2, 4 * block_size * block_size, 8, 8), out_small.shape
    assert out_small.dtype == x_small.dtype
    assert jnp.array_equal(out_small, ref_small), "Pallas SpaceToDepth mismatch (small)"

    # Larger shape that exercises the multi-step row grid / pipelined path.
    x_big = jax.random.normal(jax.random.PRNGKey(1), (4, 16, 128, 128), dtype=jnp.float32)
    out_big = jax.block_until_ready(
        jax.jit(functools.partial(space_to_depth, block_size=block_size))(x_big))
    ref_big = space_to_depth_reference(x_big, block_size)
    assert out_big.shape == (4, 16 * block_size * block_size, 64, 64), out_big.shape
    assert jnp.array_equal(out_big, ref_big), "Pallas SpaceToDepth mismatch (big)"

    print("KERNEL_OK")
</pallas_src>

<mosaic_0001>
module attributes {stable_mosaic.version = 11 : i64} {
  func.func @_space_to_depth_kernel(%arg0: i32, %arg1: memref<16x2x8x8xf32, #tpu.memory_space<vmem>>, %arg2: memref<16x8x16xf32, #tpu.memory_space<vmem>>) attributes {dimension_semantics = [#tpu.dimension_semantics<parallel>], iteration_bounds = array<i64: 1>, scalar_prefetch = 0 : i64, scratch_operands = 0 : i64, tpu.core_type = #tpu.core_type<tc>, window_params = [{transform_indices = @transform_0, window_bounds = array<i64: 16, 2, 8, 8>}, {transform_indices = @transform_1, window_bounds = array<i64: 16, 8, 16>}]} {
    %c0 = arith.constant 0 : index
    %c0_0 = arith.constant 0 : index
    %c0_1 = arith.constant 0 : index
    %c0_2 = arith.constant 0 : index
    %0 = vector.load %arg1[%c0, %c0_0, %c0_1, %c0_2] : memref<16x2x8x8xf32, #tpu.memory_space<vmem>>, vector<16x1x8x8xf32>
    %1 = vector.shape_cast %0 : vector<16x1x8x8xf32> to vector<16x8x8xf32>
    %c0_3 = arith.constant 0 : index
    %c0_4 = arith.constant 0 : index
    %c0_5 = arith.constant 0 : index
    %2 = vector.load %arg2[%c0_3, %c0_4, %c0_5] : memref<16x8x16xf32, #tpu.memory_space<vmem>>, vector<16x8x8xf32>
    tpu.vector_store %arg2[%c0_3, %c0_4, %c0_5], %1 {strides = array<i32>} : memref<16x8x16xf32, #tpu.memory_space<vmem>>, vector<16x8x8xf32>,
    %c0_6 = arith.constant 0 : index
    %c1 = arith.constant 1 : index
    %c0_7 = arith.constant 0 : index
    %c0_8 = arith.constant 0 : index
    %3 = vector.load %arg1[%c0_6, %c1, %c0_7, %c0_8] : memref<16x2x8x8xf32, #tpu.memory_space<vmem>>, vector<16x1x8x8xf32>
    %4 = vector.shape_cast %3 : vector<16x1x8x8xf32> to vector<16x8x8xf32>
    %c0_9 = arith.constant 0 : index
    %c0_10 = arith.constant 0 : index
    %c8 = arith.constant 8 : index
    %5 = vector.load %arg2[%c0_9, %c0_10, %c8] : memref<16x8x16xf32, #tpu.memory_space<vmem>>, vector<16x8x8xf32>
    tpu.vector_store %arg2[%c0_9, %c0_10, %c8], %4 {strides = array<i32>} : memref<16x8x16xf32, #tpu.memory_space<vmem>>, vector<16x8x8xf32>,
    return
  }
  func.func @transform_0(%arg0: i32) -> (i32, i32, i32, i32) {
    %c0_i32 = arith.constant 0 : i32
    %c0_i32_0 = arith.constant 0 : i32
    %c0_i32_1 = arith.constant 0 : i32
    %c0_i32_2 = arith.constant 0 : i32
    return %arg0, %c0_i32, %c0_i32_0, %c0_i32_1 : i32, i32, i32, i32
  }
  func.func @transform_1(%arg0: i32) -> (i32, i32, i32) {
    %c0_i32 = arith.constant 0 : i32
    %c0_i32_0 = arith.constant 0 : i32
    %c0_i32_1 = arith.constant 0 : i32
    return %arg0, %c0_i32, %c0_i32_0 : i32, i32, i32
  }
}

</mosaic_0001>

<bundles_post_ra>
// kernel: space_to_depth.1
= control target key start
LH: loop header
LB: loop body
LE: loop exit
PB: predicated region body
PF: predicated region fallthrough
CT: control target
= control target key end

     0   :  { %s199_s10 = smov 8   ;;  %vm25_vm0 = vcmask 64512   ;;  %s369_s0 = inlined_call_operand.vmem [shape: f32[16,2,8,8], index: 0, kind: input, shape index: {}]   ;;  %s370_s1 = inlined_call_operand.hbm [shape: f32[16,8,16], index: 1, kind: output, shape index: {}]  }
   0x1   :  { %v158_v0 = vld [vmem:[%s369_s0 + $0x28] sm:$0xff]  ;;  %v159_v2 = vld [vmem:[%s369_s0 + $0x38] sm:$0xff]  ;;  %v11_v6 = vld [vmem:[%s369_s0 + $0x20] sm:$0xff] }
   0x2   :  { %v156_v1 = vld [vmem:[%s369_s0 + $0x8] sm:$0xff]  ;;  %79 = vrot.lane.b32.xlu1 %v158_v0, %s199_s10  ;;  %v157_v3 = vld [vmem:[%s369_s0 + $0x18] sm:$0xff]  ;;  %v9_v7 = vld [vmem:[%s369_s0] sm:$0xff]  ;;  %28 = vst.msk [vmem:[#allocation2 + $0x10] sm:$0xff] %vm25_vm0, %v11_v6 }
   0x3   :  { %75 = vrot.lane.b32.xlu0 %v156_v1, %s199_s10  ;;  %v161_v4 = vld [vmem:[%s369_s0 + $0x58] sm:$0xff]  ;;  %v160_v5 = vld [vmem:[%s369_s0 + $0x48] sm:$0xff]  ;;  %v12_v8 = vld [vmem:[%s369_s0 + $0x30] sm:$0xff]  ;;  %26 = vst.msk [vmem:[#allocation2] sm:$0xff] %vm25_vm0, %v9_v7 }
   0x4   :  { %29 = vst.msk [vmem:[#allocation2 + $0x18] sm:$0xff] %vm25_vm0, %v12_v8  ;;  %v10_v9 = vld [vmem:[%s369_s0 + $0x10] sm:$0xff]  ;;  %v13_v11 = vld [vmem:[%s369_s0 + $0x40] sm:$0xff]  ;;  %v163_v12 = vld [vmem:[%s369_s0 + $0x78] sm:$0xff] }
   0x5   :  { %v14_v10 = vld [vmem:[%s369_s0 + $0x50] sm:$0xff]  ;;  %v162_v13 = vld [vmem:[%s369_s0 + $0x68] sm:$0xff]  ;;  %27 = vst.msk [vmem:[#allocation2 + $0x8] sm:$0xff] %vm25_vm0, %v10_v9  ;;  %30 = vst.msk [vmem:[#allocation2 + $0x20] sm:$0xff] %vm25_vm0, %v13_v11 }
   0x6   :  { %81 = vrot.lane.b32.xlu1 %v159_v2, %s199_s10  ;;  %31 = vst.msk [vmem:[#allocation2 + $0x28] sm:$0xff] %vm25_vm0, %v14_v10  ;;  %v16_v14 = vld [vmem:[%s369_s0 + $0x70] sm:$0xff]  ;;  %v15_v15 = vld [vmem:[%s369_s0 + $0x60] sm:$0xff] }
   0x7   :  { %77 = vrot.lane.b32.xlu0 %v157_v3, %s199_s10  ;;  %v18_v16 = vld [vmem:[%s369_s0 + $0x90] sm:$0xff]  ;;  %33 = vst.msk [vmem:[#allocation2 + $0x38] sm:$0xff] %vm25_vm0, %v16_v14  ;;  %32 = vst.msk [vmem:[#allocation2 + $0x30] sm:$0xff] %vm25_vm0, %v15_v15  ;;  %v17_v17 = vld [vmem:[%s369_s0 + $0x80] sm:$0xff] }
   0x8   :  { %35 = vst.msk [vmem:[#allocation2 + $0x48] sm:$0xff] %vm25_vm0, %v18_v16  ;;  %v20_v18 = vld [vmem:[%s369_s0 + $0xb0] sm:$0xff]  ;;  %34 = vst.msk [vmem:[#allocation2 + $0x40] sm:$0xff] %vm25_vm0, %v17_v17  ;;  %v19_v19 = vld [vmem:[%s369_s0 + $0xa0] sm:$0xff] }
   0x9   :  { %37 = vst.msk [vmem:[#allocation2 + $0x58] sm:$0xff] %vm25_vm0, %v20_v18  ;;  %v22_v20 = vld [vmem:[%s369_s0 + $0xd0] sm:$0xff]  ;;  %v21_v21 = vld [vmem:[%s369_s0 + $0xc0] sm:$0xff]  ;;  %36 = vst.msk [vmem:[#allocation2 + $0x50] sm:$0xff] %vm25_vm0, %v19_v19 }
   0xa   :  { %85 = vrot.lane.b32.xlu1 %v161_v4, %s199_s10  ;;  %39 = vst.msk [vmem:[#allocation2 + $0x68] sm:$0xff] %vm25_vm0, %v22_v20  ;;  %38 = vst.msk [vmem:[#allocation2 + $0x60] sm:$0xff] %vm25_vm0, %v21_v21 }
   0xb   :  { %83 = vrot.lane.b32.xlu0 %v160_v5, %s199_s10 }
   0xc   :  { %6 = vsyncpa [#allocation3], 0  ;;  %v165_v22 = vld [vmem:[%s369_s0 + $0x98] sm:$0xff]  ;;  %v164_v23 = vld [vmem:[%s369_s0 + $0x88] sm:$0xff]  ;;  %vm123_vm1 = vcmask 130112  }
   0xd   :  { %v24_v24 = vld [vmem:[%s369_s0 + $0xf0] sm:$0xff]  ;;  %v23_v25 = vld [vmem:[%s369_s0 + $0xe0] sm:$0xff]  ;;  %v167_v26 = vld [vmem:[%s369_s0 + $0xb8] sm:$0xff] }
   0xe   :  { %89 = vrot.lane.b32.xlu1 %v163_v12, %s199_s10  ;;  %41 = vst.msk [vmem:[#allocation2 + $0x78] sm:$0xff] %vm25_vm0, %v24_v24  ;;  %40 = vst.msk [vmem:[#allocation2 + $0x70] sm:$0xff] %vm25_vm0, %v23_v25  ;;  %v166_v27 = vld [vmem:[%s369_s0 + $0xa8] sm:$0xff]  ;;  %v169_v28 = vld [vmem:[%s369_s0 + $0xd8] sm:$0xff] }
   0xf   :  { %87 = vrot.lane.b32.xlu0 %v162_v13, %s199_s10  ;;  %v168_v29 = vld [vmem:[%s369_s0 + $0xc8] sm:$0xff]  ;;  %v171_v30 = vld [vmem:[%s369_s0 + $0xf8] sm:$0xff] }
  0x10   :  { %v170_v31 = vld [vmem:[%s369_s0 + $0xe8] sm:$0xff]  ;;  %s200_s0 = smov [#allocation2]  }
  0x11   :  { %s145_s15 = sshll.u32 %s200_s0, 4  ;;  %s146_s15 = int_to_ptr.vmem [resolvable:$true] %s145_s15 }
  0x12   :  { %93 = vrot.lane.b32.xlu1 %v165_v22, %s199_s10  ;;  %s175_s16 = scalar_lea.vmem %s146_s15, 2048  ;;  %p180_p1 = scmp.lt.s32.totalorder %s146_s15, %s146_s15 }
  0x13   :  { %91 = vrot.lane.b32.xlu0 %v164_v23, %s199_s10  ;;  %p176_p0 = scmp.ne.s32.totalorder %s146_s15, %s175_s16  ;;  %p181_p2 = scmp.lt.s32.totalorder %s175_s16, %s175_s16 }
  0x15   :  { %p182_p3 = por %p181_p2, %p180_p1 }
  0x16   :  { %97 = vrot.lane.b32.xlu1 %v167_v26, %s199_s10 }
  0x17   :  { %95 = vrot.lane.b32.xlu0 %v166_v27, %s199_s10  ;;  %p183_p4 = pnand %p182_p3, %p176_p0 }
  0x1a   :  { %101 = vrot.lane.b32.xlu1 %v169_v28, %s199_s10 }
  0x1b   :  { %99 = vrot.lane.b32.xlu0 %v168_v29, %s199_s10 }
  0x1e   :  { %105 = vrot.lane.b32.xlu1 %v171_v30, %s199_s10 }
  0x1f   :  { %103 = vrot.lane.b32.xlu0 %v170_v31, %s199_s10 }
  0x74   :  { %v80_v32 = vpop.permute.xlu1 %79 }
  0x75   :  { %v76_v33 = vpop.permute.xlu0 %75  ;;  %126 = vst.msk [vmem:[#allocation2 + $0x10] sm:$0xff] %vm123_vm1, %v80_v32 }
  0x76   :  { %124 = vst.msk [vmem:[#allocation2] sm:$0xff] %vm123_vm1, %v76_v33 }
  0x78   :  { %v82_v34 = vpop.permute.xlu1 %81 }
  0x79   :  { %v78_v35 = vpop.permute.xlu0 %77  ;;  %127 = vst.msk [vmem:[#allocation2 + $0x18] sm:$0xff] %vm123_vm1, %v82_v34 }
  0x7a   :  { %125 = vst.msk [vmem:[#allocation2 + $0x8] sm:$0xff] %vm123_vm1, %v78_v35 }
  0x7c   :  { %v86_v36 = vpop.permute.xlu1 %85 }
  0x7d   :  { %v84_v37 = vpop.permute.xlu0 %83  ;;  %129 = vst.msk [vmem:[#allocation2 + $0x28] sm:$0xff] %vm123_vm1, %v86_v36 }
  0x7e   :  { %128 = vst.msk [vmem:[#allocation2 + $0x20] sm:$0xff] %vm123_vm1, %v84_v37 }
  0x80   :  { %v90_v38 = vpop.permute.xlu1 %89 }
  0x81   :  { %v88_v39 = vpop.permute.xlu0 %87  ;;  %131 = vst.msk [vmem:[#allocation2 + $0x38] sm:$0xff] %vm123_vm1, %v90_v38 }
  0x82   :  { %130 = vst.msk [vmem:[#allocation2 + $0x30] sm:$0xff] %vm123_vm1, %v88_v39 }
  0x84   :  { %v94_v40 = vpop.permute.xlu1 %93 }
  0x85   :  { %v92_v41 = vpop.permute.xlu0 %91  ;;  %133 = vst.msk [vmem:[#allocation2 + $0x48] sm:$0xff] %vm123_vm1, %v94_v40 }
  0x86   :  { %132 = vst.msk [vmem:[#allocation2 + $0x40] sm:$0xff] %vm123_vm1, %v92_v41 }
  0x88   :  { %v98_v42 = vpop.permute.xlu1 %97 }
  0x89   :  { %v96_v43 = vpop.permute.xlu0 %95  ;;  %135 = vst.msk [vmem:[#allocation2 + $0x58] sm:$0xff] %vm123_vm1, %v98_v42 }
  0x8a   :  { %134 = vst.msk [vmem:[#allocation2 + $0x50] sm:$0xff] %vm123_vm1, %v96_v43 }
  0x8c   :  { %v102_v44 = vpop.permute.xlu1 %101 }
  0x8d   :  { %v100_v45 = vpop.permute.xlu0 %99  ;;  %137 = vst.msk [vmem:[#allocation2 + $0x68] sm:$0xff] %vm123_vm1, %v102_v44 }
  0x8e   :  { %136 = vst.msk [vmem:[#allocation2 + $0x60] sm:$0xff] %vm123_vm1, %v100_v45 }
  0x90   :  { %v106_v46 = vpop.permute.xlu1 %105 }
  0x91   :  { %v104_v47 = vpop.permute.xlu0 %103  ;;  %139 = vst.msk [vmem:[#allocation2 + $0x78] sm:$0xff] %vm123_vm1, %v106_v46 }
  0x92   :  { %138 = vst.msk [vmem:[#allocation2 + $0x70] sm:$0xff] %vm123_vm1, %v104_v47 }
  0x93   :  { %186 = shalt.err (!%p183_p4)
}
  0x94   :  { %s187_s19 = scalar_lea.hbm %s370_s1, 2048 }
  0x95   :  { %p188_p5 = scmp.ne.s32.totalorder %s370_s1, %s187_s19  ;;  %p191_p6 = scmp.lt.u32.totalorder %s187_s19, %s370_s1 }
  0x97   :  { %p193_p7 = pnand %p191_p6, %p188_p5 }
  0x99   :  { %196 = shalt.err (!%p193_p7)
}
  0x9a   :  { %s201_s24 = smov 128  }
  0x9b   :  { %151 = dma.vmem_to_hbm [thread:$0]  %s146_s15, 2048, %s370_s1, [#allocation3], %s201_s24, %s201_s24, %s199_s10  }
  0x9c   :  { %197 = dma.done.wait [#allocation3], 2048  }
  0x9d   :  { %198 = vsyncadd [#allocation3], 4294965248 }
  0x9e   :  { %155 = vsyncpa [#allocation3], 1 }

</bundles_post_ra>
